<compile_context>
chip_gen: v7x
topology: tpu7x:2x2x1
jax: 0.10.0
libtpu: 0.0.40
codegen_flags: <defaults>
</compile_context>

<pallas_src>
import jax
import jax.numpy as jnp
import numpy as np
from jax.experimental import pallas as pl
from jax.experimental.pallas import tpu as pltpu


def _mish(x):
    """x * tanh(softplus(x)), rewritten with one exp + one approx reciprocal.

    With t = e^x:  tanh(softplus(x)) = t*(t+2) / (t*(t+2) + 2)  (exact).
    Clamp the exp argument and switch to the identity for large x.
    """
    t = jnp.exp(jnp.minimum(x, 20.0))
    u = t * (t + 2.0)
    y = x * u * pl.reciprocal(u + 2.0, approx=True)
    return jnp.where(x > 20.0, x, y)


def _log_softmax(x):
    m = jnp.max(x, axis=-1, keepdims=True)
    z = x - m
    return z - jnp.log(jnp.sum(jnp.exp(z), axis=-1, keepdims=True))


def _round_up(n, m):
    return ((n + m - 1) // m) * m


def _nbytes(a):
    return int(a.size) * a.dtype.itemsize


def _vmem_capacity_bytes():
    """Physical per-core VMEM; conservative (v7x-sized) fallback if unknown."""
    try:
        info = pltpu.get_tpu_info()
        for name in ("vmem_capacity_bytes", "vmem_size_bytes", "vmem_bytes"):
            v = getattr(info, name, None)
            if v:
                return int(v)
    except Exception:
        pass
    return 64 * 2**20


# ---------------------------------------------------------------------------
# Kernel 1: entity classifier + fused [P | Q] projection (once per batch row).
# ---------------------------------------------------------------------------
def entity_pq_kernel(emb_ref,
                     w1e_ref, b1e_ref, w2e_ref, b2e_ref,
                     wpq_emb_ref, wpq_ent_ref, bpq_ref,
                     entity_ref, p_ref, q_ref):
    H = emb_ref.shape[2]
    E = entity_ref.shape[2]
    emb = emb_ref[0].astype(jnp.bfloat16)                                  # (S, H)

    # entity classifier (dropout p=0.2 is identity at inference)
    h = jnp.dot(emb, w1e_ref[...], preferred_element_type=jnp.float32) + b1e_ref[...]
    h = _mish(h)
    logits_full = (jnp.dot(h.astype(jnp.bfloat16), w2e_ref[...],
                           preferred_element_type=jnp.float32)
                   + b2e_ref[...])                                         # (S, 128); pad lanes exactly 0
    entity_ref[0] = _log_softmax(logits_full[:, :E])                       # softmax over true width only

    # fused [P | Q] projection of linear_layer:
    #   linear_layer(cat(e_i, e_j)) = e_i @ W_left + e_j @ W_right + bl,
    #   with e = cat(emb, entity_logits); bl is folded into the Q half.
    # Padded logit lanes are exactly 0 and the matching rows of wpq_ent are 0,
    # so the padding contributes exactly 0 (no -1e30 / NaN hazards).
    pq = (jnp.dot(emb, wpq_emb_ref[...], preferred_element_type=jnp.float32)
          + jnp.dot(logits_full.astype(jnp.bfloat16), wpq_ent_ref[...],
                    preferred_element_type=jnp.float32)
          + bpq_ref[...])                                                  # (S, 2H) f32
    p_ref[0] = pq[:, :H]
    q_ref[0] = pq[:, H:]


# ---------------------------------------------------------------------------
# Kernel 2: pairwise features + related classifier, tiled over query rows.
# Grid (B, num_q); both axes are independent ("parallel", "parallel").
# ---------------------------------------------------------------------------
def relation_kernel(p_ref, q_ref, w1r_ref, b1r_ref, w2r_ref, b2r_ref, related_ref):
    i = pl.program_id(1)
    S = q_ref.shape[1]
    H = q_ref.shape[2]
    R = related_ref.shape[2]
    TQ = related_ref.shape[1] // S

    start = pl.multiple_of(i * TQ, TQ)
    p_blk = p_ref[0, pl.ds(start, TQ), :]                                  # (TQ, H) f32
    q_all = q_ref[0]                                                       # (S, H) f32, bias folded in

    # Row (q*S + j) of ssd is tanh(P[q] + Q[j]): one broadcast add, then a
    # leading-dim collapse.  TQ*S is kept a multiple of 8 so the
    # (TQ, S, H) -> (TQ*S, H) collapse stays sublane-aligned (no relayout copy).
    ssd = jnp.tanh(p_blk[:, None, :] + q_all[None, :, :]).reshape(TQ * S, H)
    ssd = ssd.astype(jnp.bfloat16)

    h2 = jnp.dot(ssd, w1r_ref[...], preferred_element_type=jnp.float32) + b1r_ref[...]
    h2 = _mish(h2)
    logits_full = (jnp.dot(h2.astype(jnp.bfloat16), w2r_ref[...],
                           preferred_element_type=jnp.float32)
                   + b2r_ref[...])                                         # (TQ*S, 128)
    related_ref[0] = _log_softmax(logits_full[:, :R])                      # store only R real lanes


def _pick_tq(S, H, RP, budget_bytes):
    """Largest legal query-row tile whose per-block footprint fits the budget.

    Legal TQ: divides S and TQ*S is a multiple of 8 (sublane-aligned output
    block), or TQ == S (block equals the full axis).  If nothing fits, fall
    back to the *smallest* legal tile -- never the whole axis.
    """
    # per query row (conservative, f32/bf16 temps + 128-lane logits + 2 out bufs)
    per_row = S * (14 * H + 16 * RP) + 16 * H
    cap = max(1, budget_bytes // max(per_row, 1))
    legal = [t for t in range(1, S) if S % t == 0 and (t * S) % 8 == 0] + [S]
    fitting = [t for t in legal if t <= cap]
    return max(fitting) if fitting else min(legal)


def joint_entity_relation(emb, w1e, b1e, w2e, b2e, wl, bl, w1r, b1r, w2r, b2r):
    """emb: (B, S, H) f32; weights stored transposed (in, out); biases (1, out).

    Returns entity log-probs (B, S, E) and related log-probs (B, S*S, R)."""
    B, S, H = emb.shape
    E = w2e.shape[1]
    R = w2r.shape[1]
    f32, bf16 = jnp.float32, jnp.bfloat16
    EP = _round_up(E, 128)      # classifier matmuls stay 128-lane wide (zero pad)
    RP = _round_up(R, 128)

    # ---- trace-time weight prep: bf16 matmul operands, f32 biases ----
    w1e_b = w1e.astype(bf16)
    w1r_b = w1r.astype(bf16)
    w2e_p = jnp.zeros((H, EP), f32).at[:, :E].set(w2e).astype(bf16)
    b2e_p = jnp.zeros((1, EP), f32).at[:, :E].set(b2e)          # pad bias = 0 (sliced before softmax)
    w2r_p = jnp.zeros((H, RP), f32).at[:, :R].set(w2r).astype(bf16)
    b2r_p = jnp.zeros((1, RP), f32).at[:, :R].set(b2r)

    # split linear_layer weight: left half multiplies e_i (-> P), right half e_j (-> Q);
    # within each, split emb rows vs entity-logit rows; fuse P/Q along the out-dim.
    HE = H + E
    wl_P, wl_Q = wl[:HE], wl[HE:]
    w_pq_emb = jnp.concatenate([wl_P[:H], wl_Q[:H]], axis=1).astype(bf16)          # (H, 2H)
    w_pq_ent = jnp.zeros((EP, 2 * H), f32).at[:E, :].set(
        jnp.concatenate([wl_P[H:], wl_Q[H:]], axis=1)).astype(bf16)                # (EP, 2H), pad rows 0
    b_pq = jnp.concatenate([jnp.zeros_like(bl), bl], axis=1).astype(f32)           # (1, 2H), bl in Q half

    b1e_f = b1e.astype(f32)
    b1r_f = b1r.astype(f32)

    ent_weights = (w1e_b, b1e_f, w2e_p, b2e_p, w_pq_emb, w_pq_ent, b_pq)
    rel_weights = (w1r_b, b1r_f, w2r_p, b2r_p)

    # ---- generation-aware VMEM budget & relation-path tiling ----
    cap = _vmem_capacity_bytes()
    vmem_limit = (88 * 2**20) if cap >= 100 * 2**20 else (38 * 2**20)

    rel_weight_bytes = 2 * sum(_nbytes(a) for a in rel_weights)   # worst case: double-buffered
    fixed_bytes = 2 * 2 * 4 * S * H                               # P + Q input blocks, f32, x2 buffers
    budget = max(vmem_limit - rel_weight_bytes - fixed_bytes - 6 * 2**20, 2 * 2**20)
    TQ = _pick_tq(S, H, RP, budget)
    num_q = S // TQ

    def _run(buffered):
        def rep(shape, grid_rank):
            zeros = (0,) * len(shape)
            idx = (lambda b: zeros) if grid_rank == 1 else (lambda b, i: zeros)
            kw = {"pipeline_mode": pl.Buffered(1)} if buffered else {}
            return pl.BlockSpec(shape, idx, **kw)

        # --- kernel 1: entity log-probs + P/Q (one grid step per batch row) ---
        entity, p_mat, q_mat = pl.pallas_call(
            entity_pq_kernel,
            grid=(B,),
            in_specs=([pl.BlockSpec((1, S, H), lambda b: (b, 0, 0))]
                      + [rep(a.shape, 1) for a in ent_weights]),
            out_specs=(pl.BlockSpec((1, S, E), lambda b: (b, 0, 0)),
                       pl.BlockSpec((1, S, H), lambda b: (b, 0, 0)),
                       pl.BlockSpec((1, S, H), lambda b: (b, 0, 0))),
            out_shape=(jax.ShapeDtypeStruct((B, S, E), f32),
                       jax.ShapeDtypeStruct((B, S, H), f32),
                       jax.ShapeDtypeStruct((B, S, H), f32)),
            compiler_params=pltpu.CompilerParams(
                dimension_semantics=("parallel",),
                vmem_limit_bytes=int(vmem_limit)),
        )(emb, *ent_weights)

        # --- kernel 2: O(S^2) relation path, tiled over query-row blocks ---
        related = pl.pallas_call(
            relation_kernel,
            grid=(B, num_q),
            in_specs=([pl.BlockSpec((1, S, H), lambda b, i: (b, 0, 0)),
                       pl.BlockSpec((1, S, H), lambda b, i: (b, 0, 0))]
                      + [rep(a.shape, 2) for a in rel_weights]),
            out_specs=pl.BlockSpec((1, TQ * S, R), lambda b, i: (b, i, 0)),
            out_shape=jax.ShapeDtypeStruct((B, S * S, R), f32),
            compiler_params=pltpu.CompilerParams(
                dimension_semantics=("parallel", "parallel"),
                vmem_limit_bytes=int(vmem_limit)),
        )(p_mat, q_mat, *rel_weights)

        return entity, related

    try:
        return _run(buffered=True)
    except Exception:
        # This jax/Mosaic build does not accept pipeline_mode=pl.Buffered(1)
        # on pallas_call BlockSpecs; fall back to default double buffering.
        return _run(buffered=False)


def joint_reference(emb, w1e, b1e, w2e, b2e, wl, bl, w1r, b1r, w2r, b2r):
    """Pure-JAX f32 reference of the PyTorch forward (eval mode)."""
    hp = jax.lax.Precision.HIGHEST

    def classifier(x, w1, bb1, w2, bb2):
        h = jnp.dot(x, w1, precision=hp) + bb1
        h = h * jnp.tanh(jax.nn.softplus(h))
        logits = jnp.dot(h, w2, precision=hp) + bb2
        return logits, jax.nn.log_softmax(logits, axis=-1)

    B, S, H = emb.shape
    logits_e, entity = classifier(emb, w1e, b1e, w2e, b2e)
    ee = jnp.concatenate([emb, logits_e], axis=-1)
    D = ee.shape[-1]
    pair = jnp.concatenate(
        [jnp.broadcast_to(ee[:, :, None, :], (B, S, S, D)),
         jnp.broadcast_to(ee[:, None, :, :], (B, S, S, D))], axis=-1)
    pair = pair.reshape(B, S * S, 2 * D)
    ssd = jnp.tanh(jnp.dot(pair, wl, precision=hp) + bl)
    _, related = classifier(ssd, w1r, b1r, w2r, b2r)
    return entity, related


def init_linear(key, fan_in, fan_out):
    """PyTorch nn.Linear default init; weight stored transposed as (in, out)."""
    kw, kb = jax.random.split(key)
    bound = 1.0 / (fan_in ** 0.5)
    w = jax.random.uniform(kw, (fan_in, fan_out), jnp.float32, -bound, bound)
    b = jax.random.uniform(kb, (1, fan_out), jnp.float32, -bound, bound)
    return w, b


if __name__ == "__main__":
    # Small shapes consistent with the module: batch=2, seq=8, hdim=32,
    # edim=len(utils.ENTITIES)->4, rdim=len(utils.RELATIONS)->6.
    B, S, H, E, R = 2, 8, 32, 4, 6

    key = jax.random.PRNGKey(0)
    k_emb, k1, k2, k3, k4, k5 = jax.random.split(key, 6)

    # Stand-in for beto(**tokens)['last_hidden_state'].
    emb = jax.random.normal(k_emb, (B, S, H), jnp.float32)

    w1e, b1e = init_linear(k1, H, H)            # entity_classifier.linear1
    w2e, b2e = init_linear(k2, H, E)            # entity_classifier.linear2
    wl,  bl  = init_linear(k3, 2 * (H + E), H)  # linear_layer
    w1r, b1r = init_linear(k4, H, H)            # related_classifier.linear1
    w2r, b2r = init_linear(k5, H, R)            # related_classifier.linear2

    entity, related = joint_entity_relation(emb, w1e, b1e, w2e, b2e,
                                            wl, bl, w1r, b1r, w2r, b2r)
    jax.block_until_ready((entity, related))
    assert entity.shape == (B, S, E) and related.shape == (B, S * S, R)

    ref_e, ref_r = joint_reference(emb, w1e, b1e, w2e, b2e, wl, bl, w1r, b1r, w2r, b2r)
    # bf16 matmul operands (f32 accumulation) vs f32 reference -> 3e-2 tolerance.
    np.testing.assert_allclose(np.asarray(entity), np.asarray(ref_e), rtol=3e-2, atol=3e-2)
    np.testing.assert_allclose(np.asarray(related), np.asarray(ref_r), rtol=3e-2, atol=3e-2)

    print("KERNEL_OK")
</pallas_src>

<mosaic_0001>
module attributes {stable_mosaic.version = 11 : i64} {
  func.func @entity_pq_kernel(%arg0: i32, %arg1: memref<1x8x32xf32, #tpu.memory_space<vmem>>, %arg2: memref<32x32xbf16, #tpu.memory_space<vmem>>, %arg3: memref<1x32xf32, #tpu.memory_space<vmem>>, %arg4: memref<32x128xbf16, #tpu.memory_space<vmem>>, %arg5: memref<1x128xf32, #tpu.memory_space<vmem>>, %arg6: memref<32x64xbf16, #tpu.memory_space<vmem>>, %arg7: memref<128x64xbf16, #tpu.memory_space<vmem>>, %arg8: memref<1x64xf32, #tpu.memory_space<vmem>>, %arg9: memref<1x8x4xf32, #tpu.memory_space<vmem>>, %arg10: memref<1x8x32xf32, #tpu.memory_space<vmem>>, %arg11: memref<1x8x32xf32, #tpu.memory_space<vmem>>) attributes {dimension_semantics = [#tpu.dimension_semantics<parallel>], iteration_bounds = array<i64: 2>, scalar_prefetch = 0 : i64, scratch_operands = 0 : i64, tpu.core_type = #tpu.core_type<tc>, window_params = [{transform_indices = @transform_0, window_bounds = array<i64: 1, 8, 32>}, {pipeline_mode = #tpu.pipeline_mode<synchronous>, transform_indices = @transform_1, window_bounds = array<i64: 32, 32>}, {pipeline_mode = #tpu.pipeline_mode<synchronous>, transform_indices = @transform_2, window_bounds = array<i64: 1, 32>}, {pipeline_mode = #tpu.pipeline_mode<synchronous>, transform_indices = @transform_3, window_bounds = array<i64: 32, 128>}, {pipeline_mode = #tpu.pipeline_mode<synchronous>, transform_indices = @transform_4, window_bounds = array<i64: 1, 128>}, {pipeline_mode = #tpu.pipeline_mode<synchronous>, transform_indices = @transform_5, window_bounds = array<i64: 32, 64>}, {pipeline_mode = #tpu.pipeline_mode<synchronous>, transform_indices = @transform_6, window_bounds = array<i64: 128, 64>}, {pipeline_mode = #tpu.pipeline_mode<synchronous>, transform_indices = @transform_7, window_bounds = array<i64: 1, 64>}, {transform_indices = @transform_8, window_bounds = array<i64: 1, 8, 4>}, {transform_indices = @transform_9, window_bounds = array<i64: 1, 8, 32>}, {transform_indices = @transform_10, window_bounds = array<i64: 1, 8, 32>}]} {
    %c0 = arith.constant 0 : index
    %c0_0 = arith.constant 0 : index
    %c0_1 = arith.constant 0 : index
    %0 = vector.load %arg1[%c0, %c0_0, %c0_1] : memref<1x8x32xf32, #tpu.memory_space<vmem>>, vector<1x8x32xf32>
    %1 = vector.shape_cast %0 : vector<1x8x32xf32> to vector<8x32xf32>
    %2 = arith.truncf %1 : vector<8x32xf32> to vector<8x32xbf16>
    %c0_2 = arith.constant 0 : index
    %c0_3 = arith.constant 0 : index
    %3 = vector.load %arg2[%c0_2, %c0_3] : memref<32x32xbf16, #tpu.memory_space<vmem>>, vector<32x32xbf16>
    %cst = arith.constant dense<0.000000e+00> : vector<8x32xf32>
    %4 = tpu.matmul %2, %3, %cst {dimension_numbers = #tpu.dot_dimension_numbers<[1], [0], [0], [1], [0, 0, 1, 1], [], []>} : vector<8x32xbf16>, vector<32x32xbf16>, vector<8x32xf32> -> vector<8x32xf32>
    %c0_4 = arith.constant 0 : index
    %c0_5 = arith.constant 0 : index
    %5 = vector.load %arg3[%c0_4, %c0_5] : memref<1x32xf32, #tpu.memory_space<vmem>>, vector<1x32xf32>
    %6 = vector.broadcast %5 : vector<1x32xf32> to vector<8x32xf32>
    %7 = arith.addf %4, %6 : vector<8x32xf32>
    %cst_6 = arith.constant 2.000000e+01 : f32
    %8 = vector.broadcast %cst_6 : f32 to vector<8x32xf32>
    %9 = arith.minimumf %7, %8 : vector<8x32xf32>
    %10 = math.exp %9 : vector<8x32xf32>
    %cst_7 = arith.constant 2.000000e+00 : f32
    %11 = vector.broadcast %cst_7 : f32 to vector<8x32xf32>
    %12 = arith.addf %10, %11 : vector<8x32xf32>
    %13 = arith.mulf %10, %12 : vector<8x32xf32>
    %14 = arith.mulf %7, %13 : vector<8x32xf32>
    %cst_8 = arith.constant 2.000000e+00 : f32
    %15 = vector.broadcast %cst_8 : f32 to vector<8x32xf32>
    %16 = arith.addf %13, %15 : vector<8x32xf32>
    %17 = tpu.reciprocal %16 {approx = true} : vector<8x32xf32> -> vector<8x32xf32>
    %18 = arith.mulf %14, %17 : vector<8x32xf32>
    %cst_9 = arith.constant 2.000000e+01 : f32
    %19 = vector.broadcast %cst_9 : f32 to vector<8x32xf32>
    %20 = arith.cmpf ogt, %7, %19 : vector<8x32xf32>
    %21 = arith.select %20, %7, %18 : vector<8x32xi1>, vector<8x32xf32>
    %22 = arith.truncf %21 : vector<8x32xf32> to vector<8x32xbf16>
    %c0_10 = arith.constant 0 : index
    %c0_11 = arith.constant 0 : index
    %23 = vector.load %arg4[%c0_10, %c0_11] : memref<32x128xbf16, #tpu.memory_space<vmem>>, vector<32x128xbf16>
    %cst_12 = arith.constant dense<0.000000e+00> : vector<8x128xf32>
    %24 = tpu.matmul %22, %23, %cst_12 {dimension_numbers = #tpu.dot_dimension_numbers<[1], [0], [0], [1], [0, 0, 1, 1], [], []>} : vector<8x32xbf16>, vector<32x128xbf16>, vector<8x128xf32> -> vector<8x128xf32>
    %c0_13 = arith.constant 0 : index
    %c0_14 = arith.constant 0 : index
    %25 = vector.load %arg5[%c0_13, %c0_14] : memref<1x128xf32, #tpu.memory_space<vmem>>, vector<1x128xf32>
    %26 = vector.broadcast %25 : vector<1x128xf32> to vector<8x128xf32>
    %27 = arith.addf %24, %26 : vector<8x128xf32>
    %28 = vector.extract_strided_slice %27 {offsets = [0, 0], sizes = [8, 4], strides = [1, 1]} : vector<8x128xf32> to vector<8x4xf32>
    %cst_15 = arith.constant dense<0xFF800000> : vector<8xf32>
    %29 = vector.multi_reduction <maximumf>, %28, %cst_15 [1] : vector<8x4xf32> to vector<8xf32>
    %30 = vector.shape_cast %29 : vector<8xf32> to vector<8x1xf32>
    %31 = vector.broadcast %30 : vector<8x1xf32> to vector<8x4xf32>
    %32 = arith.subf %28, %31 : vector<8x4xf32>
    %33 = math.exp %32 : vector<8x4xf32>
    %cst_16 = arith.constant dense<0.000000e+00> : vector<8xf32>
    %34 = vector.multi_reduction <add>, %33, %cst_16 [1] : vector<8x4xf32> to vector<8xf32>
    %35 = vector.shape_cast %34 : vector<8xf32> to vector<8x1xf32>
    %36 = math.log %35 : vector<8x1xf32>
    %37 = vector.broadcast %36 : vector<8x1xf32> to vector<8x4xf32>
    %38 = arith.subf %32, %37 : vector<8x4xf32>
    %c0_17 = arith.constant 0 : index
    %c0_18 = arith.constant 0 : index
    %c0_19 = arith.constant 0 : index
    %39 = vector.load %arg9[%c0_17, %c0_18, %c0_19] : memref<1x8x4xf32, #tpu.memory_space<vmem>>, vector<1x8x4xf32>
    %40 = vector.shape_cast %39 : vector<1x8x4xf32> to vector<8x4xf32>
    %41 = vector.shape_cast %38 : vector<8x4xf32> to vector<1x8x4xf32>
    tpu.vector_store %arg9[%c0_17, %c0_18, %c0_19], %41 {strides = array<i32>} : memref<1x8x4xf32, #tpu.memory_space<vmem>>, vector<1x8x4xf32>,
    %c0_20 = arith.constant 0 : index
    %c0_21 = arith.constant 0 : index
    %42 = vector.load %arg6[%c0_20, %c0_21] : memref<32x64xbf16, #tpu.memory_space<vmem>>, vector<32x64xbf16>
    %cst_22 = arith.constant dense<0.000000e+00> : vector<8x64xf32>
    %43 = tpu.matmul %2, %42, %cst_22 {dimension_numbers = #tpu.dot_dimension_numbers<[1], [0], [0], [1], [0, 0, 1, 1], [], []>} : vector<8x32xbf16>, vector<32x64xbf16>, vector<8x64xf32> -> vector<8x64xf32>
    %44 = arith.truncf %27 : vector<8x128xf32> to vector<8x128xbf16>
    %c0_23 = arith.constant 0 : index
    %c0_24 = arith.constant 0 : index
    %45 = vector.load %arg7[%c0_23, %c0_24] : memref<128x64xbf16, #tpu.memory_space<vmem>>, vector<128x64xbf16>
    %cst_25 = arith.constant dense<0.000000e+00> : vector<8x64xf32>
    %46 = tpu.matmul %44, %45, %cst_25 {dimension_numbers = #tpu.dot_dimension_numbers<[1], [0], [0], [1], [0, 0, 1, 1], [], []>} : vector<8x128xbf16>, vector<128x64xbf16>, vector<8x64xf32> -> vector<8x64xf32>
    %47 = arith.addf %43, %46 : vector<8x64xf32>
    %c0_26 = arith.constant 0 : index
    %c0_27 = arith.constant 0 : index
    %48 = vector.load %arg8[%c0_26, %c0_27] : memref<1x64xf32, #tpu.memory_space<vmem>>, vector<1x64xf32>
    %49 = vector.broadcast %48 : vector<1x64xf32> to vector<8x64xf32>
    %50 = arith.addf %47, %49 : vector<8x64xf32>
    %51 = vector.extract_strided_slice %50 {offsets = [0, 0], sizes = [8, 32], strides = [1, 1]} : vector<8x64xf32> to vector<8x32xf32>
    %c0_28 = arith.constant 0 : index
    %c0_29 = arith.constant 0 : index
    %c0_30 = arith.constant 0 : index
    %52 = vector.load %arg10[%c0_28, %c0_29, %c0_30] : memref<1x8x32xf32, #tpu.memory_space<vmem>>, vector<1x8x32xf32>
    %53 = vector.shape_cast %52 : vector<1x8x32xf32> to vector<8x32xf32>
    %54 = vector.shape_cast %51 : vector<8x32xf32> to vector<1x8x32xf32>
    tpu.vector_store %arg10[%c0_28, %c0_29, %c0_30], %54 {strides = array<i32>} : memref<1x8x32xf32, #tpu.memory_space<vmem>>, vector<1x8x32xf32>,
    %55 = vector.extract_strided_slice %50 {offsets = [0, 32], sizes = [8, 32], strides = [1, 1]} : vector<8x64xf32> to vector<8x32xf32>
    %c0_31 = arith.constant 0 : index
    %c0_32 = arith.constant 0 : index
    %c0_33 = arith.constant 0 : index
    %56 = vector.load %arg11[%c0_31, %c0_32, %c0_33] : memref<1x8x32xf32, #tpu.memory_space<vmem>>, vector<1x8x32xf32>
    %57 = vector.shape_cast %56 : vector<1x8x32xf32> to vector<8x32xf32>
    %58 = vector.shape_cast %55 : vector<8x32xf32> to vector<1x8x32xf32>
    tpu.vector_store %arg11[%c0_31, %c0_32, %c0_33], %58 {strides = array<i32>} : memref<1x8x32xf32, #tpu.memory_space<vmem>>, vector<1x8x32xf32>,
    return
  }
  func.func @transform_0(%arg0: i32) -> (i32, i32, i32) {
    %c0_i32 = arith.constant 0 : i32
    %c0_i32_0 = arith.constant 0 : i32
    %c0_i32_1 = arith.constant 0 : i32
    return %arg0, %c0_i32, %c0_i32_0 : i32, i32, i32
  }
  func.func @transform_1(%arg0: i32) -> (i32, i32) {
    %c0_i32 = arith.constant 0 : i32
    %c0_i32_0 = arith.constant 0 : i32
    %c0_i32_1 = arith.constant 0 : i32
    return %c0_i32, %c0_i32_0 : i32, i32
  }
  func.func @transform_2(%arg0: i32) -> (i32, i32) {
    %c0_i32 = arith.constant 0 : i32
    %c0_i32_0 = arith.constant 0 : i32
    %c0_i32_1 = arith.constant 0 : i32
    return %c0_i32, %c0_i32_0 : i32, i32
  }
  func.func @transform_3(%arg0: i32) -> (i32, i32) {
    %c0_i32 = arith.constant 0 : i32
    %c0_i32_0 = arith.constant 0 : i32
    %c0_i32_1 = arith.constant 0 : i32
    return %c0_i32, %c0_i32_0 : i32, i32
  }
  func.func @transform_4(%arg0: i32) -> (i32, i32) {
    %c0_i32 = arith.constant 0 : i32
    %c0_i32_0 = arith.constant 0 : i32
    %c0_i32_1 = arith.constant 0 : i32
    return %c0_i32, %c0_i32_0 : i32, i32
  }
  func.func @transform_5(%arg0: i32) -> (i32, i32) {
    %c0_i32 = arith.constant 0 : i32
    %c0_i32_0 = arith.constant 0 : i32
    %c0_i32_1 = arith.constant 0 : i32
    return %c0_i32, %c0_i32_0 : i32, i32
  }
  func.func @transform_6(%arg0: i32) -> (i32, i32) {
    %c0_i32 = arith.constant 0 : i32
    %c0_i32_0 = arith.constant 0 : i32
    %c0_i32_1 = arith.constant 0 : i32
    return %c0_i32, %c0_i32_0 : i32, i32
  }
  func.func @transform_7(%arg0: i32) -> (i32, i32) {
    %c0_i32 = arith.constant 0 : i32
    %c0_i32_0 = arith.constant 0 : i32
    %c0_i32_1 = arith.constant 0 : i32
    return %c0_i32, %c0_i32_0 : i32, i32
  }
  func.func @transform_8(%arg0: i32) -> (i32, i32, i32) {
    %c0_i32 = arith.constant 0 : i32
    %c0_i32_0 = arith.constant 0 : i32
    %c0_i32_1 = arith.constant 0 : i32
    return %arg0, %c0_i32, %c0_i32_0 : i32, i32, i32
  }
  func.func @transform_9(%arg0: i32) -> (i32, i32, i32) {
    %c0_i32 = arith.constant 0 : i32
    %c0_i32_0 = arith.constant 0 : i32
    %c0_i32_1 = arith.constant 0 : i32
    return %arg0, %c0_i32, %c0_i32_0 : i32, i32, i32
  }
  func.func @transform_10(%arg0: i32) -> (i32, i32, i32) {
    %c0_i32 = arith.constant 0 : i32
    %c0_i32_0 = arith.constant 0 : i32
    %c0_i32_1 = arith.constant 0 : i32
    return %arg0, %c0_i32, %c0_i32_0 : i32, i32, i32
  }
}

module attributes {stable_mosaic.version = 11 : i64} {
  func.func @entity_pq_kernel(%arg0: i32, %arg1: memref<1x8x32xf32, #tpu.memory_space<vmem>>, %arg2: memref<32x32xbf16, #tpu.memory_space<vmem>>, %arg3: memref<1x32xf32, #tpu.memory_space<vmem>>, %arg4: memref<32x128xbf16, #tpu.memory_space<vmem>>, %arg5: memref<1x128xf32, #tpu.memory_space<vmem>>, %arg6: memref<32x64xbf16, #tpu.memory_space<vmem>>, %arg7: memref<128x64xbf16, #tpu.memory_space<vmem>>, %arg8: memref<1x64xf32, #tpu.memory_space<vmem>>, %arg9: memref<1x8x4xf32, #tpu.memory_space<vmem>>, %arg10: memref<1x8x32xf32, #tpu.memory_space<vmem>>, %arg11: memref<1x8x32xf32, #tpu.memory_space<vmem>>) attributes {dimension_semantics = [#tpu.dimension_semantics<parallel>], iteration_bounds = array<i64: 2>, scalar_prefetch = 0 : i64, scratch_operands = 0 : i64, tpu.core_type = #tpu.core_type<tc>, window_params = [{transform_indices = @transform_0, window_bounds = array<i64: 1, 8, 32>}, {pipeline_mode = #tpu.pipeline_mode<synchronous>, transform_indices = @transform_1, window_bounds = array<i64: 32, 32>}, {pipeline_mode = #tpu.pipeline_mode<synchronous>, transform_indices = @transform_2, window_bounds = array<i64: 1, 32>}, {pipeline_mode = #tpu.pipeline_mode<synchronous>, transform_indices = @transform_3, window_bounds = array<i64: 32, 128>}, {pipeline_mode = #tpu.pipeline_mode<synchronous>, transform_indices = @transform_4, window_bounds = array<i64: 1, 128>}, {pipeline_mode = #tpu.pipeline_mode<synchronous>, transform_indices = @transform_5, window_bounds = array<i64: 32, 64>}, {pipeline_mode = #tpu.pipeline_mode<synchronous>, transform_indices = @transform_6, window_bounds = array<i64: 128, 64>}, {pipeline_mode = #tpu.pipeline_mode<synchronous>, transform_indices = @transform_7, window_bounds = array<i64: 1, 64>}, {transform_indices = @transform_8, window_bounds = array<i64: 1, 8, 4>}, {transform_indices = @transform_9, window_bounds = array<i64: 1, 8, 32>}, {transform_indices = @transform_10, window_bounds = array<i64: 1, 8, 32>}]} {
    %c0 = arith.constant 0 : index
    %c0_0 = arith.constant 0 : index
    %c0_1 = arith.constant 0 : index
    %0 = vector.load %arg1[%c0, %c0_0, %c0_1] : memref<1x8x32xf32, #tpu.memory_space<vmem>>, vector<1x8x32xf32>
    %1 = vector.shape_cast %0 : vector<1x8x32xf32> to vector<8x32xf32>
    %2 = arith.truncf %1 : vector<8x32xf32> to vector<8x32xbf16>
    %c0_2 = arith.constant 0 : index
    %c0_3 = arith.constant 0 : index
    %3 = vector.load %arg2[%c0_2, %c0_3] : memref<32x32xbf16, #tpu.memory_space<vmem>>, vector<32x32xbf16>
    %cst = arith.constant dense<0.000000e+00> : vector<8x32xf32>
    %4 = tpu.matmul %2, %3, %cst {dimension_numbers = #tpu.dot_dimension_numbers<[1], [0], [0], [1], [0, 0, 1, 1], [], []>} : vector<8x32xbf16>, vector<32x32xbf16>, vector<8x32xf32> -> vector<8x32xf32>
    %c0_4 = arith.constant 0 : index
    %c0_5 = arith.constant 0 : index
    %5 = vector.load %arg3[%c0_4, %c0_5] : memref<1x32xf32, #tpu.memory_space<vmem>>, vector<1x32xf32>
    %6 = vector.broadcast %5 : vector<1x32xf32> to vector<8x32xf32>
    %7 = arith.addf %4, %6 : vector<8x32xf32>
    %cst_6 = arith.constant 2.000000e+01 : f32
    %8 = vector.broadcast %cst_6 : f32 to vector<8x32xf32>
    %9 = arith.minimumf %7, %8 : vector<8x32xf32>
    %10 = math.exp %9 : vector<8x32xf32>
    %cst_7 = arith.constant 2.000000e+00 : f32
    %11 = vector.broadcast %cst_7 : f32 to vector<8x32xf32>
    %12 = arith.addf %10, %11 : vector<8x32xf32>
    %13 = arith.mulf %10, %12 : vector<8x32xf32>
    %14 = arith.mulf %7, %13 : vector<8x32xf32>
    %cst_8 = arith.constant 2.000000e+00 : f32
    %15 = vector.broadcast %cst_8 : f32 to vector<8x32xf32>
    %16 = arith.addf %13, %15 : vector<8x32xf32>
    %17 = tpu.reciprocal %16 {approx = true} : vector<8x32xf32> -> vector<8x32xf32>
    %18 = arith.mulf %14, %17 : vector<8x32xf32>
    %cst_9 = arith.constant 2.000000e+01 : f32
    %19 = vector.broadcast %cst_9 : f32 to vector<8x32xf32>
    %20 = arith.cmpf ogt, %7, %19 : vector<8x32xf32>
    %21 = arith.select %20, %7, %18 : vector<8x32xi1>, vector<8x32xf32>
    %22 = arith.truncf %21 : vector<8x32xf32> to vector<8x32xbf16>
    %c0_10 = arith.constant 0 : index
    %c0_11 = arith.constant 0 : index
    %23 = vector.load %arg4[%c0_10, %c0_11] : memref<32x128xbf16, #tpu.memory_space<vmem>>, vector<32x128xbf16>
    %cst_12 = arith.constant dense<0.000000e+00> : vector<8x128xf32>
    %24 = tpu.matmul %22, %23, %cst_12 {dimension_numbers = #tpu.dot_dimension_numbers<[1], [0], [0], [1], [0, 0, 1, 1], [], []>} : vector<8x32xbf16>, vector<32x128xbf16>, vector<8x128xf32> -> vector<8x128xf32>
    %c0_13 = arith.constant 0 : index
    %c0_14 = arith.constant 0 : index
    %25 = vector.load %arg5[%c0_13, %c0_14] : memref<1x128xf32, #tpu.memory_space<vmem>>, vector<1x128xf32>
    %26 = vector.broadcast %25 : vector<1x128xf32> to vector<8x128xf32>
    %27 = arith.addf %24, %26 : vector<8x128xf32>
    %28 = vector.extract_strided_slice %27 {offsets = [0, 0], sizes = [8, 4], strides = [1, 1]} : vector<8x128xf32> to vector<8x4xf32>
    %cst_15 = arith.constant dense<0xFF800000> : vector<8xf32>
    %29 = vector.multi_reduction <maximumf>, %28, %cst_15 [1] : vector<8x4xf32> to vector<8xf32>
    %30 = vector.shape_cast %29 : vector<8xf32> to vector<8x1xf32>
    %31 = vector.broadcast %30 : vector<8x1xf32> to vector<8x4xf32>
    %32 = arith.subf %28, %31 : vector<8x4xf32>
    %33 = math.exp %32 : vector<8x4xf32>
    %cst_16 = arith.constant dense<0.000000e+00> : vector<8xf32>
    %34 = vector.multi_reduction <add>, %33, %cst_16 [1] : vector<8x4xf32> to vector<8xf32>
    %35 = vector.shape_cast %34 : vector<8xf32> to vector<8x1xf32>
    %36 = math.log %35 : vector<8x1xf32>
    %37 = vector.broadcast %36 : vector<8x1xf32> to vector<8x4xf32>
    %38 = arith.subf %32, %37 : vector<8x4xf32>
    %c0_17 = arith.constant 0 : index
    %c0_18 = arith.constant 0 : index
    %c0_19 = arith.constant 0 : index
    %39 = vector.load %arg9[%c0_17, %c0_18, %c0_19] : memref<1x8x4xf32, #tpu.memory_space<vmem>>, vector<1x8x4xf32>
    %40 = vector.shape_cast %39 : vector<1x8x4xf32> to vector<8x4xf32>
    %41 = vector.shape_cast %38 : vector<8x4xf32> to vector<1x8x4xf32>
    tpu.vector_store %arg9[%c0_17, %c0_18, %c0_19], %41 {strides = array<i32>} : memref<1x8x4xf32, #tpu.memory_space<vmem>>, vector<1x8x4xf32>,
    %c0_20 = arith.constant 0 : index
    %c0_21 = arith.constant 0 : index
    %42 = vector.load %arg6[%c0_20, %c0_21] : memref<32x64xbf16, #tpu.memory_space<vmem>>, vector<32x64xbf16>
    %cst_22 = arith.constant dense<0.000000e+00> : vector<8x64xf32>
    %43 = tpu.matmul %2, %42, %cst_22 {dimension_numbers = #tpu.dot_dimension_numbers<[1], [0], [0], [1], [0, 0, 1, 1], [], []>} : vector<8x32xbf16>, vector<32x64xbf16>, vector<8x64xf32> -> vector<8x64xf32>
    %44 = arith.truncf %27 : vector<8x128xf32> to vector<8x128xbf16>
    %c0_23 = arith.constant 0 : index
    %c0_24 = arith.constant 0 : index
    %45 = vector.load %arg7[%c0_23, %c0_24] : memref<128x64xbf16, #tpu.memory_space<vmem>>, vector<128x64xbf16>
    %cst_25 = arith.constant dense<0.000000e+00> : vector<8x64xf32>
    %46 = tpu.matmul %44, %45, %cst_25 {dimension_numbers = #tpu.dot_dimension_numbers<[1], [0], [0], [1], [0, 0, 1, 1], [], []>} : vector<8x128xbf16>, vector<128x64xbf16>, vector<8x64xf32> -> vector<8x64xf32>
    %47 = arith.addf %43, %46 : vector<8x64xf32>
    %c0_26 = arith.constant 0 : index
    %c0_27 = arith.constant 0 : index
    %48 = vector.load %arg8[%c0_26, %c0_27] : memref<1x64xf32, #tpu.memory_space<vmem>>, vector<1x64xf32>
    %49 = vector.broadcast %48 : vector<1x64xf32> to vector<8x64xf32>
    %50 = arith.addf %47, %49 : vector<8x64xf32>
    %51 = vector.extract_strided_slice %50 {offsets = [0, 0], sizes = [8, 32], strides = [1, 1]} : vector<8x64xf32> to vector<8x32xf32>
    %c0_28 = arith.constant 0 : index
    %c0_29 = arith.constant 0 : index
    %c0_30 = arith.constant 0 : index
    %52 = vector.load %arg10[%c0_28, %c0_29, %c0_30] : memref<1x8x32xf32, #tpu.memory_space<vmem>>, vector<1x8x32xf32>
    %53 = vector.shape_cast %52 : vector<1x8x32xf32> to vector<8x32xf32>
    %54 = vector.shape_cast %51 : vector<8x32xf32> to vector<1x8x32xf32>
    tpu.vector_store %arg10[%c0_28, %c0_29, %c0_30], %54 {strides = array<i32>} : memref<1x8x32xf32, #tpu.memory_space<vmem>>, vector<1x8x32xf32>,
    %55 = vector.extract_strided_slice %50 {offsets = [0, 32], sizes = [8, 32], strides = [1, 1]} : vector<8x64xf32> to vector<8x32xf32>
    %c0_31 = arith.constant 0 : index
    %c0_32 = arith.constant 0 : index
    %c0_33 = arith.constant 0 : index
    %56 = vector.load %arg11[%c0_31, %c0_32, %c0_33] : memref<1x8x32xf32, #tpu.memory_space<vmem>>, vector<1x8x32xf32>
    %57 = vector.shape_cast %56 : vector<1x8x32xf32> to vector<8x32xf32>
    %58 = vector.shape_cast %55 : vector<8x32xf32> to vector<1x8x32xf32>
    tpu.vector_store %arg11[%c0_31, %c0_32, %c0_33], %58 {strides = array<i32>} : memref<1x8x32xf32, #tpu.memory_space<vmem>>, vector<1x8x32xf32>,
    return
  }
  func.func @transform_0(%arg0: i32) -> (i32, i32, i32) {
    %c0_i32 = arith.constant 0 : i32
    %c0_i32_0 = arith.constant 0 : i32
    %c0_i32_1 = arith.constant 0 : i32
    return %arg0, %c0_i32, %c0_i32_0 : i32, i32, i32
  }
  func.func @transform_1(%arg0: i32) -> (i32, i32) {
    %c0_i32 = arith.constant 0 : i32
    %c0_i32_0 = arith.constant 0 : i32
    %c0_i32_1 = arith.constant 0 : i32
    return %c0_i32, %c0_i32_0 : i32, i32
  }
  func.func @transform_2(%arg0: i32) -> (i32, i32) {
    %c0_i32 = arith.constant 0 : i32
    %c0_i32_0 = arith.constant 0 : i32
    %c0_i32_1 = arith.constant 0 : i32
    return %c0_i32, %c0_i32_0 : i32, i32
  }
  func.func @transform_3(%arg0: i32) -> (i32, i32) {
    %c0_i32 = arith.constant 0 : i32
    %c0_i32_0 = arith.constant 0 : i32
    %c0_i32_1 = arith.constant 0 : i32
    return %c0_i32, %c0_i32_0 : i32, i32
  }
  func.func @transform_4(%arg0: i32) -> (i32, i32) {
    %c0_i32 = arith.constant 0 : i32
    %c0_i32_0 = arith.constant 0 : i32
    %c0_i32_1 = arith.constant 0 : i32
    return %c0_i32, %c0_i32_0 : i32, i32
  }
  func.func @transform_5(%arg0: i32) -> (i32, i32) {
    %c0_i32 = arith.constant 0 : i32
    %c0_i32_0 = arith.constant 0 : i32
    %c0_i32_1 = arith.constant 0 : i32
    return %c0_i32, %c0_i32_0 : i32, i32
  }
  func.func @transform_6(%arg0: i32) -> (i32, i32) {
    %c0_i32 = arith.constant 0 : i32
    %c0_i32_0 = arith.constant 0 : i32
    %c0_i32_1 = arith.constant 0 : i32
    return %c0_i32, %c0_i32_0 : i32, i32
  }
  func.func @transform_7(%arg0: i32) -> (i32, i32) {
    %c0_i32 = arith.constant 0 : i32
    %c0_i32_0 = arith.constant 0 : i32
    %c0_i32_1 = arith.constant 0 : i32
    return %c0_i32, %c0_i32_0 : i32, i32
  }
  func.func @transform_8(%arg0: i32) -> (i32, i32, i32) {
    %c0_i32 = arith.constant 0 : i32
    %c0_i32_0 = arith.constant 0 : i32
    %c0_i32_1 = arith.constant 0 : i32
    return %arg0, %c0_i32, %c0_i32_0 : i32, i32, i32
  }
  func.func @transform_9(%arg0: i32) -> (i32, i32, i32) {
    %c0_i32 = arith.constant 0 : i32
    %c0_i32_0 = arith.constant 0 : i32
    %c0_i32_1 = arith.constant 0 : i32
    return %arg0, %c0_i32, %c0_i32_0 : i32, i32, i32
  }
  func.func @transform_10(%arg0: i32) -> (i32, i32, i32) {
    %c0_i32 = arith.constant 0 : i32
    %c0_i32_0 = arith.constant 0 : i32
    %c0_i32_1 = arith.constant 0 : i32
    return %arg0, %c0_i32, %c0_i32_0 : i32, i32, i32
  }
}

</mosaic_0001>

<bundles_post_ra>
// kernel: tpu_custom_call.1
= control target key start
LH: loop header
LB: loop body
LE: loop exit
PB: predicated region body
PF: predicated region fallthrough
CT: control target
= control target key end

     0   :  { %s1420_s0 = inlined_call_operand.vmem [shape: f32[2,8,32], index: 0, kind: input, shape index: {}]   ;;  %s1421_s1 = inlined_call_operand.vmem [shape: bf16[32,32], index: 1, kind: input, shape index: {}]   ;;  %s1422_s2 = inlined_call_operand.vmem [shape: f32[1,32], index: 2, kind: input, shape index: {}]   ;;  %s1423_s3 = inlined_call_operand.vmem [shape: bf16[32,128], index: 3, kind: input, shape index: {}]   ;;  %s1424_s4 = inlined_call_operand.vmem [shape: f32[1,128], index: 4, kind: input, shape index: {}]   ;;  %s1425_s5 = inlined_call_operand.vmem [shape: bf16[32,64], index: 5, kind: input, shape index: {}]   ;;  %s1426_s6 = inlined_call_operand.vmem [shape: bf16[128,64], index: 6, kind: input, shape index: {}]   ;;  %s1427_s7 = inlined_call_operand.vmem [shape: f32[1,64], index: 7, kind: input, shape index: {}]   ;;  %s1428_s8 = inlined_call_operand.vmem [shape: f32[2,8,4], index: 8, kind: output, shape index: {0}]   ;;  %s1429_s9 = inlined_call_operand.hbm [shape: f32[2,8,32], index: 9, kind: output, shape index: {1}]   ;;  %s1430_s10 = inlined_call_operand.hbm [shape: f32[2,8,32], index: 10, kind: output, shape index: {2}]  }
   0x1   :  { %1434 = sst [smem:[#allocation8_spill]] %s1420_s0 }
   0x2   :  { %1435 = sst [smem:[#allocation9_spill]] %s1421_s1 }
   0x3   :  { %1436 = sst [smem:[#allocation10_spill]] %s1422_s2 }
   0x4   :  { %1437 = sst [smem:[#allocation11_spill]] %s1423_s3 }
   0x5   :  { %16 = vsyncpa [#allocation3], 0 }
   0x6   :  { %18 = vsyncpa [#allocation3 + $0x1], 0 }
   0x7   :  { %19 = vsyncpa [#allocation5], 0 }
   0x8   :  { %21 = vsyncpa [#allocation5 + $0x1], 0  ;;  %s1188_s13 = smov 0   ;;  %s1190_s14 = smov 0  }
   0x9   :  { %s1192_s15 = smov 0   ;;  %s1194_s16 = smov 0  }
   0xa LB: > { %s1209_s17 = sadd.s32 4294967295, %s1126_s16   ;;  %s867_s18 = sadd.s32 4294967294, %s1126_s16   ;;  %s1126_s16 = sphi %s1194_s16, %s1450_s16   ;;  %s1122_s15 = sphi %s1192_s15, %s1449_s15   ;;  %s1118_s14 = sphi %s1190_s14, %s1448_s14   ;;  %s1114_s13 = sphi %s1188_s13, %s1447_s13  }
   0xb   : > { %s1213_s19 = sadd.s32 1, %s1126_s16   ;;  %s233_s20 = sadd.s32 1, %s1122_s15 }
   0xc   : > { %s230_s21 = ssub.s32 %s1126_s16, %s1213_s19  ;;  %p243_p0 = scmp.ne.s32.totalorder %s1122_s15, %s1118_s14 }
   0xd   : > { %p231_p1 = scmp.eq.s32.totalorder %s230_s21, 0  ;;  %p244_p2 = scmp.eq.s32.totalorder %s1209_s17, 1 }
   0xe   : > { %p249_p3 = scmp.ne.s32.totalorder %s1118_s14, %s1114_s13  ;;  %p250_p4 = scmp.eq.s32.totalorder %s867_s18, 1 }
   0xf   : > { %s1224_s22 = scalar_select %p231_p1, %s1122_s15, %s233_s20  }
  0x10   : > { %p1226_p5 = por %p244_p2, %p243_p0  ;;  %p1230_p6 = por %p250_p4, %p249_p3 }
  0x11   : > { %p870_p7 = scmp.ge.s32.totalorder %s1126_s16, 1  ;;  %p322_p8 = scmp.lt.s32.totalorder %s1126_s16, 3 }
  0x13   : > { %p323_p9 = pnand %p870_p7, %p322_p8 }
  0x14   : > { %s1440_s1 = sld [smem:[#allocation9_spill]] (!%p323_p9)  ;;  %v1128_v1 = vmov (!%p323_p9), 0.0   ;;  %vm1129_vm0 = vmmov (!%p323_p9), 0   ;;  %p368_p10 = scmp.lt.s32.totalorder (!%p323_p9), %s1209_s17, 1  ;;  %vm402_vm1 = vcmask (!%p323_p9), 261120   ;;  %v1014_v7 = vld [vmem:[%s1426_s6] sm:$0xff] (!%p323_p9)  }
  0x15   : > { %326 = sbr.rel (%p323_p9) target bundleno = 847 (0x34f), region = 52  ;;  %919 = vmatprep.subr.bf16.mxu1 (!%p323_p9), %v1128_v1  ;;  %935 = vmatprep.subr.bf16.mxu0 (!%p323_p9), %v1128_v1  ;;  %s1441_s0 = sld [smem:[#allocation8_spill]] (!%p323_p9)  ;;  %v1015_v8 = vld [vmem:[%s1426_s6 + $0x8] sm:$0xff] (!%p323_p9)   ;;  %v1016_v9 = vld [vmem:[%s1426_s6 + $0x10] sm:$0xff] (!%p323_p9)   ;;  %v1017_v10 = vld [vmem:[%s1426_s6 + $0x18] sm:$0xff] (!%p323_p9)   ;;  %vm524_vm3 = vcmask (!%p323_p9), 31744  }
  0x16   : > { %923 = vmatprep.mubr.msk.bf16.mxu1 (!%p323_p9), %vm1129_vm0, %v1128_v1  ;;  %951 = vmatprep.mubr.msk.bf16.mxu0 (!%p323_p9), %vm1129_vm0, %v1128_v1  ;;  %s1442_s3 = sld [smem:[#allocation11_spill]] (!%p323_p9)  ;;  %v1018_v11 = vld [vmem:[%s1426_s6 + $0x20] sm:$0xff] (!%p323_p9)   ;;  %v1019_v12 = vld [vmem:[%s1426_s6 + $0x28] sm:$0xff] (!%p323_p9)   ;;  %v1021_v13 = vld [vmem:[%s1426_s6 + $0x30] sm:$0xff] (!%p323_p9)   ;;  %s1443_s2 = sld [smem:[#allocation10_spill]] (!%p323_p9) }
  0x17   : > { %936 = vmatpush3.bf16.msra.mxu0 (!%p323_p9), %v1014_v7  ;;  %v1020_v30 = vld [vmem:[%s1425_s5] sm:$0xff] (!%p323_p9)   ;;  %v1022_v32 = vld [vmem:[%s1425_s5 + $0x8] sm:$0xff] (!%p323_p9)   ;;  %v1023_v33 = vld [vmem:[%s1426_s6 + $0x38] sm:$0xff] (!%p323_p9)   ;;  %s1322_s21 = sand.u32 (!%p323_p9), 1, %s1118_s14   ;;  %s1433_s28 = sshll.u32 (!%p323_p9), %s1209_s17, 7 }
  0x18   : > { %937 = vmatprep.subr.bf16.mxu0 (!%p323_p9), %v1128_v1  ;;  %v879_v34 = vld [vmem:[%s1424_s4] ss:$0 sm:$0xff] (!%p323_p9)  ;;  %s1432_s25 = sshll.u32 (!%p323_p9), %s1322_s21, 3  ;;  %s1130_s26 = smov (!%p323_p9), 96  }
  0x19   : > { %v894_v52 = vld [vmem:[%s1427_s7] ss:$0 sm:$0xff] (!%p323_p9)  ;;  %s360_s11 = scalar_lea.vmem (!%p323_p9), [#allocation2], %s1432_s25  ;;  %s718_s27 = scalar_lea.sflag (!%p323_p9), [#allocation3], %s1322_s21 }
  0x1a   : > { %v1010_v0 = vld [vmem:[%s1440_s1] sm:$0xff] (!%p323_p9)   ;;  %v1011_v2 = vld [vmem:[%s1440_s1 + $0x8] sm:$0xff] (!%p323_p9)   ;;  %s739_s12 = sshll.u32 (!%p323_p9), %s360_s11, 4  ;;  %s1338_s12 = int_to_ptr.vmem [resolvable:$true] %s739_s12 }
  0x1b   : > { %920 = vmatpush3.bf16.msra.mxu1 (!%p323_p9), %v1010_v0  ;;  %938 = vmatpush3.bf16.msra.mxu0 (!%p323_p9), %v1015_v8  ;;  %s1032_s25 = scalar_lea.vmem (!%p323_p9), %s1338_s12, 128 }
  0x1c   : > { %921 = vmatprep.subr.bf16.mxu1 %v1128_v1  ;;  %s1251_s29 = scalar_select %p368_p10, %s1209_s17, 1  ;;  %v1012_v5 = vld [vmem:[%s1442_s3] sm:$0xff]   ;;  %v1013_v6 = vld [vmem:[%s1442_s3 + $0x8] sm:$0xff]   ;;  %939 = vmatprep.subr.bf16.mxu0 %v1128_v1 }
  0x1d   : > { %v875_v14 = vld [vmem:[%s1443_s2] ss:$0 sm:$0xff]  ;;  %p1033_p11 = scmp.ne.s32.totalorder %s1338_s12, %s1032_s25 }
  0x1e   : > { %s1431_s30 = sshll.u32 %s1251_s29, 3 }
  0x1f   : > { %922 = vmatpush3.bf16.msra.mxu1 %v1011_v2  ;;  %s371_s18 = scalar_lea.vmem %s1441_s0, %s1431_s30  ;;  %940 = vmatpush3.bf16.msra.mxu0 %v1016_v9  ;;  %s1336_s30 = scalar_lea.hbm %s1429_s9, %s1433_s28 }
  0x20   : > { %927 = vmatprep.subr.bf16.mxu1 %v1128_v1  ;;  %v377_v3 = vld [vmem:[%s371_s18] sm:$0xff]  ;;  %941 = vmatprep.subr.bf16.mxu0 %v1128_v1  ;;  %p1034_p12 = pnand %p1033_p11, %p1226_p5  ;;  %s1131_s0 = smov [#allocation2]  }
  0x21   : > { %v378_v4 = vpack.c.bf16 %v377_v3, %v377_v3  ;;  %s1036_s1 = sshll.u32 %s1131_s0, 4  ;;  %s1037_s1 = int_to_ptr.vmem [resolvable:$false] %s1036_s1 }
  0x22   : > { %p1035_p13 = pneg %p1034_p12  ;;  %s1038_s18 = scalar_lea.vmem %s1037_s1, 256 }
  0x23   : > { %924 = vmatmul.mubr.msk.bf16.vlgmr.msra.gmra.mrb[0].mxu1 %vm402_vm1, %v378_v4  ;;  %942 = vmatpush3.bf16.msra.mxu0 %v1017_v10  ;;  %p1039_p0 = scmp.lt.s32.totalorder %s1338_s12, %s1037_s1  ;;  %p1040_p1 = scmp.lt.s32.totalorder %s1038_s18, %s1032_s25 }
  0x24   : > { %931 = vmatprep.mubr.msk.bf16.mxu1 %vm1129_vm0, %v1128_v1  ;;  %928 = vmatpush3.bf16.msra.mxu1 %v1012_v5 }
  0x25   : > { %929 = vmatprep.subr.bf16.mxu1 %v1128_v1  ;;  %943 = vmatprep.subr.bf16.mxu0 %v1128_v1  ;;  %p1041_p2 = por %p1040_p1, %p1039_p0 }
  0x27   : > { %944 = vmatpush3.bf16.msra.mxu0 %v1018_v11  ;;  %p1042_p3 = pnand %p1041_p2, %p1035_p13 }
  0x28   : > { %930 = vmatpush3.bf16.msra.mxu1 %v1013_v6  ;;  %945 = vmatprep.subr.bf16.mxu0 %v1128_v1 }
  0x29   : > { %955 = vmatprep.subr.bf16.mxu1 %v1128_v1 }
  0x2b   : > { %946 = vmatpush3.bf16.msra.mxu0 %v1019_v12 }
  0x2c   : > { %947 = vmatprep.subr.bf16.mxu0 %v1128_v1 }
  0x2f   : > { %948 = vmatpush3.bf16.msra.mxu0 %v1021_v13 }
  0x30   : > { %949 = vmatprep.subr.bf16.mxu0 %v1128_v1 }
  0x33   : > { %950 = vmatpush3.bf16.msra.mxu0 %v1023_v33 }
  0xf6   : > { %v440_v15 = vpop.f32.mrb[0].mxu1 }
  0xf7   : > { %v441_v16 = vadd.f32 %v875_v14, %v440_v15  ;;  %v925_v17 = vpop.f32.mrb[1].mxu1 }
  0xf8   : > { %v443_v18 = vpop.f32.mrb[2].mxu1 }
  0xf9   : > { %v446_v19 = vmin.f32 %v441_v16, 20.0  ;;  %v926_v20 = vpop.f32.mrb[3].mxu1  ;;  %vm455_vm2 = vcmp.gt.f32.partialorder %v441_v16, 20.0 }
  0xfb   : > { %v447_v21 = vmul.f32 1.442695, %v446_v19 }
  0xfd   : > { %1024 = vpow2.f32 %v447_v21 }
 0x107   : > { %v1025_v22 = vpop.eup %1024 }
 0x108   : > { %v449_v23 = vadd.f32 2.0, %v1025_v22 }
 0x10a   : > { %v450_v24 = vmul.f32 %v1025_v22, %v449_v23 }
 0x10c   : > { %v452_v25 = vadd.f32 2.0, %v450_v24  ;;  %v451_v26 = vmul.f32 %v450_v24, %v441_v16 }
 0x10e   : > { %1026 = vrcp.f32 %v452_v25 }
 0x118   : > { %v1027_v27 = vpop.eup %1026 }
 0x119   : > { %v454_v28 = vmul.f32 %v1027_v27, %v451_v26 }
 0x11b   : > { %v456_v29 = vsel %vm455_vm2, %v441_v16, %v454_v28 }
 0x11c   : > { %v457_v31 = vpack.c.bf16 %v456_v29, %v456_v29 }
 0x11e   : > { %932 = vmatmul.mubr.msk.bf16.vlgmr.msra.gmra.mrb[4].mxu1 %vm402_vm1, %v457_v31 }
 0x11f   : > { %956 = vmatpush3.bf16.msra.mxu1 %v1020_v30  ;;  %959 = vmatprep.mubr.msk.bf16.mxu1 %vm1129_vm0, %v1128_v1 }
 0x120   : > { %957 = vmatprep.subr.bf16.mxu1 %v1128_v1 }
 0x123   : > { %958 = vmatpush3.bf16.msra.mxu1 %v1022_v32 }
 0x126   : > { %960 = vmatmul.mubr.msk.bf16.vlgmr.msra.gmra.mrb[8].mxu1 %vm402_vm1, %v378_v4 }
 0x1f1   : > { %v518_v35 = vpop.f32.mrb[4].mxu1 }
 0x1f2   : > { %v519_v36 = vadd.f32 %v879_v34, %v518_v35  ;;  %v933_v37 = vpop.f32.mrb[5].mxu1 }
 0x1f3   : > { %v521_v38 = vpop.f32.mrb[6].mxu1 }
 0x1f4   : > { %v934_v39 = vpop.f32.mrb[7].mxu1  ;;  %v525_v40 = vsel %vm524_vm3, %v519_v36, -inf  ;;  %v542_v41 = vpack.c.bf16 %v519_v36, %v519_v36 }
 0x1f5   : > { %526 = vmax.xlane.f32.xlu0 %v525_v40 }
 0x1f6   : > { %952 = vmatmul.mubr.bf16.vlgmr.msra.gmra.mrb[0].mxu0 %v542_v41 }
 0x1f9   : > { %v693_v42 = vpop.f32.mrb[8].mxu1 }
 0x1fa   : > { %v961_v43 = vpop.f32.mrb[9].mxu1 }
 0x1fb   : > { %v696_v44 = vpop.f32.mrb[10].mxu1 }
 0x1fc   : > { %v962_v45 = vpop.f32.mrb[11].mxu1 }
 0x282   : > { %v527_v46 = vpop.xlane.xlu0 %526 }
 0x283   : > { %v528_v47 = vsub.f32 %v519_v36, %v527_v46 }
 0x285   : > { %v529_v48 = vmul.f32 1.442695, %v528_v47 }
 0x287   : > { %1028 = vpow2.f32 %v529_v48 }
 0x291   : > { %v1029_v49 = vpop.eup %1028 }
 0x292   : > { %v531_v50 = vsel %vm524_vm3, %v1029_v49, 0.0 }
 0x293   : > { %532 = vadd.xlane.f32.xlu0 %v531_v50 }
 0x2c9   : > { %v641_v51 = vpop.f32.mrb[0].mxu0 }
 0x2ca   : > { %v694_v53 = vadd.f32 %v693_v42, %v641_v51  ;;  %v953_v54 = vpop.f32.mrb[1].mxu0 }
 0x2cb   : > { %v644_v55 = vpop.f32.mrb[2].mxu0 }
 0x2cc   : > { %v954_v56 = vpop.f32.mrb[3].mxu0  ;;  %v706_v57 = vadd.f32 %v894_v52, %v694_v53 }
 0x2ce   : > { %709 = vrot.lane.b32.xlu1 %v706_v57, %s1130_s26  ;;  %707 = vst.msk [vmem:[%s360_s11] sm:$0xff] %vm402_vm1, %v706_v57 }
 0x2cf   : > { %1045 = shalt.err (!%p1042_p3)
}
 0x2d0   : > { %s1046_s11 = scalar_lea.hbm %s1336_s30, 128  ;;  %s1050_s0 = scalar_lea.hbm %s1429_s9, 256 }
 0x2d1   : > { %p1047_p4 = scmp.ne.s32.totalorder %s1336_s30, %s1046_s11  ;;  %p1051_p9 = scmp.lt.u32.totalorder %s1336_s30, %s1429_s9 }
 0x2d2   : > { %p1052_p10 = scmp.lt.u32.totalorder %s1050_s0, %s1046_s11  ;;  %p1054_p12 = scmp.lt.u32.totalorder %s1046_s11, %s1336_s30 }
 0x2d3   : > { %p1048_p7 = pnand %p1047_p4, %p1226_p5 }
 0x2d4   : > { %p1053_p11 = por %p1052_p10, %p1051_p9 }
 0x2d5   : > { %p1049_p8 = pneg %p1048_p7 }
 0x2d6   : > { %p1055_p13 = por %p1054_p12, %p1053_p11 }
 0x2d8   : > { %p1056_p0 = pnand %p1055_p13, %p1049_p8 }
 0x2da   : > { %1059 = shalt.err (!%p1056_p0)
}
 0x2db   : > { %963 = dma.vmem_to_hbm [thread:$0]  (%p1226_p5), %s1338_s12, 128, %s1336_s30, %s718_s27  }
 0x2dc   : > { %s1444_s25 = sshll.u32 %s1251_s29, 3  ;;  %s1445_s20 = sshll.u32 %s1322_s21, 3 }
 0x2dd   : > { %s375_s11 = scalar_lea.vmem %s1428_s8, %s1444_s25  ;;  %s367_s26 = scalar_lea.vmem [#allocation4], %s1445_s20 }
 0x2de   : > { %s752_s0 = sshll.u32 %s367_s26, 4  ;;  %s1446_s1 = sshll.u32 %s1209_s17, 7  ;;  %s1378_s0 = int_to_ptr.vmem [resolvable:$true] %s752_s0 }
 0x2df   : > { %s1376_s30 = scalar_lea.hbm %s1430_s10, %s1446_s1  ;;  %s723_s29 = scalar_lea.sflag [#allocation5], %s1322_s21 }
 0x2e0   : > { %s1060_s12 = scalar_lea.vmem %s1378_s0, 128  ;;  %s1132_s17 = smov [#allocation4]  }
 0x2e1   : > { %p1061_p1 = scmp.ne.s32.totalorder %s1378_s0, %s1060_s12  ;;  %s1064_s27 = sshll.u32 %s1132_s17, 4  ;;  %s1065_s27 = int_to_ptr.vmem [resolvable:$false] %s1064_s27 }
 0x2e2   : > { %s1066_s2 = scalar_lea.vmem %s1065_s27, 256  ;;  %p1067_p4 = scmp.lt.s32.totalorder %s1378_s0, %s1065_s27 }
 0x2e3   : > { %p1062_p2 = pnand %p1061_p1, %p1226_p5  ;;  %p1068_p7 = scmp.lt.s32.totalorder %s1066_s2, %s1060_s12 }
 0x2e5   : > { %p1063_p3 = pneg %p1062_p2  ;;  %p1069_p8 = por %p1068_p7, %p1067_p4 }
 0x2e7   : > { %p1070_p9 = pnand %p1069_p8, %p1063_p3 }
 0x320   : > { %v533_v58 = vpop.xlane.xlu0 %532 }
 0x321   : > { %1030 = vlog2.f32 %v533_v58 }
 0x32b   : > { %v1031_v59 = vpop.eup %1030 }
 0x32c   : > { %v535_v60 = vmul.f32 0.6931472, %v1031_v59 }
 0x32e   : > { %v536_v61 = vsub.f32 %v528_v47, %v535_v60 }
 0x330   : > { %537 = vst.msk [vmem:[%s375_s11] sm:$0xff] %vm524_vm3, %v536_v61 }
 0x340   : > { %v710_v62 = vpop.permute.xlu1 %709 }
 0x341   : > { %712 = vst.msk [vmem:[%s367_s26] sm:$0xff] %vm402_vm1, %v710_v62 }
 0x342   : > { %1073 = shalt.err (!%p1070_p9)
}
 0x343   : > { %s1074_s3 = scalar_lea.hbm %s1376_s30, 128  ;;  %s1078_s28 = scalar_lea.hbm %s1430_s10, 256 }
 0x344   : > { %p1075_p10 = scmp.ne.s32.totalorder %s1376_s30, %s1074_s3  ;;  %p1079_p13 = scmp.lt.u32.totalorder %s1376_s30, %s1430_s10 }
 0x345   : > { %p1080_p0 = scmp.lt.u32.totalorder %s1078_s28, %s1074_s3  ;;  %p1082_p2 = scmp.lt.u32.totalorder %s1074_s3, %s1376_s30 }
 0x346   : > { %p1076_p11 = pnand %p1075_p10, %p1226_p5 }
 0x347   : > { %p1081_p1 = por %p1080_p0, %p1079_p13 }
 0x348   : > { %p1077_p12 = pneg %p1076_p11 }
 0x349   : > { %p1083_p3 = por %p1082_p2, %p1081_p1 }
 0x34b   : > { %p1084_p4 = pnand %p1083_p3, %p1077_p12 }
 0x34d   : > { %1087 = shalt.err (!%p1084_p4)
}
 0x34e   : > { %964 = dma.vmem_to_hbm [thread:$0]  (%p1226_p5), %s1378_s0, 128, %s1376_s30, %s723_s29  }
 0x34f PF: > { %p974_p7 = scmp.ge.s32.totalorder %s1126_s16, 2  ;;  %s771_s20 = sand.u32 1, %s1114_s13  }
 0x350   : > { %s772_s26 = scalar_lea.sflag [#allocation3], %s771_s20 }
 0x351   : > { %p968_p8 = pnand %p974_p7, %p1230_p6 }
 0x353   : > { %1105 = dma.done.wait (!%p968_p8), %s772_s26, 128  }
 0x354   : > { %1107 = vsyncadd (!%p968_p8), %s772_s26, 4294967168  ;;  %s781_s1 = scalar_lea.sflag [#allocation5], %s771_s20 }
 0x355   : > { %1109 = dma.done.wait (!%p968_p8), %s781_s1, 128  }
 0x356   : > { %1111 = vsyncadd (!%p968_p8), %s781_s1, 4294967168  ;;  %p24_p5 = scmp.ge.s32.totalorder %s1213_s19, 4   ;;  %s1447_s13 = smov %s1118_s14 }
 0x357   : > { %s1448_s14 = smov %s1122_s15  ;;  %s1449_s15 = smov %s1224_s22 }
 0x358   : > { %s1450_s16 = smov %s1213_s19  ;;  %26 = sbr.rel (!%p24_p5) target bundleno = 10 (0xa), region = 116 }
 0x35f   :  { %786 = vsyncpa [#allocation3], 1 }
 0x360   :  { %788 = vsyncpa [#allocation3 + $0x1], 1 }
 0x361   :  { %789 = vsyncpa [#allocation5], 1 }
 0x362   :  { %791 = vsyncpa [#allocation5 + $0x1], 1 }

// kernel: tpu_custom_call.1
= control target key start
LH: loop header
LB: loop body
LE: loop exit
PB: predicated region body
PF: predicated region fallthrough
CT: control target
= control target key end

     0   :  { %s1420_s0 = inlined_call_operand.vmem [shape: f32[2,8,32], index: 0, kind: input, shape index: {}]   ;;  %s1421_s1 = inlined_call_operand.vmem [shape: bf16[32,32], index: 1, kind: input, shape index: {}]   ;;  %s1422_s2 = inlined_call_operand.vmem [shape: f32[1,32], index: 2, kind: input, shape index: {}]   ;;  %s1423_s3 = inlined_call_operand.vmem [shape: bf16[32,128], index: 3, kind: input, shape index: {}]   ;;  %s1424_s4 = inlined_call_operand.vmem [shape: f32[1,128], index: 4, kind: input, shape index: {}]   ;;  %s1425_s5 = inlined_call_operand.vmem [shape: bf16[32,64], index: 5, kind: input, shape index: {}]   ;;  %s1426_s6 = inlined_call_operand.vmem [shape: bf16[128,64], index: 6, kind: input, shape index: {}]   ;;  %s1427_s7 = inlined_call_operand.vmem [shape: f32[1,64], index: 7, kind: input, shape index: {}]   ;;  %s1428_s8 = inlined_call_operand.vmem [shape: f32[2,8,4], index: 8, kind: output, shape index: {0}]   ;;  %s1429_s9 = inlined_call_operand.hbm [shape: f32[2,8,32], index: 9, kind: output, shape index: {1}]   ;;  %s1430_s10 = inlined_call_operand.hbm [shape: f32[2,8,32], index: 10, kind: output, shape index: {2}]  }
   0x1   :  { %1434 = sst [smem:[#allocation8_spill]] %s1420_s0 }
   0x2   :  { %1435 = sst [smem:[#allocation9_spill]] %s1421_s1 }
   0x3   :  { %1436 = sst [smem:[#allocation10_spill]] %s1422_s2 }
   0x4   :  { %1437 = sst [smem:[#allocation11_spill]] %s1423_s3 }
   0x5   :  { %16 = vsyncpa [#allocation3], 0 }
   0x6   :  { %18 = vsyncpa [#allocation3 + $0x1], 0 }
   0x7   :  { %19 = vsyncpa [#allocation5], 0 }
   0x8   :  { %21 = vsyncpa [#allocation5 + $0x1], 0  ;;  %s1188_s13 = smov 0   ;;  %s1190_s14 = smov 0  }
   0x9   :  { %s1192_s15 = smov 0   ;;  %s1194_s16 = smov 0  }
   0xa LB: > { %s1209_s17 = sadd.s32 4294967295, %s1126_s16   ;;  %s867_s18 = sadd.s32 4294967294, %s1126_s16   ;;  %s1126_s16 = sphi %s1194_s16, %s1450_s16   ;;  %s1122_s15 = sphi %s1192_s15, %s1449_s15   ;;  %s1118_s14 = sphi %s1190_s14, %s1448_s14   ;;  %s1114_s13 = sphi %s1188_s13, %s1447_s13  }
   0xb   : > { %s1213_s19 = sadd.s32 1, %s1126_s16   ;;  %s233_s20 = sadd.s32 1, %s1122_s15 }
   0xc   : > { %s230_s21 = ssub.s32 %s1126_s16, %s1213_s19  ;;  %p243_p0 = scmp.ne.s32.totalorder %s1122_s15, %s1118_s14 }
   0xd   : > { %p231_p1 = scmp.eq.s32.totalorder %s230_s21, 0  ;;  %p244_p2 = scmp.eq.s32.totalorder %s1209_s17, 1 }
   0xe   : > { %p249_p3 = scmp.ne.s32.totalorder %s1118_s14, %s1114_s13  ;;  %p250_p4 = scmp.eq.s32.totalorder %s867_s18, 1 }
   0xf   : > { %s1224_s22 = scalar_select %p231_p1, %s1122_s15, %s233_s20  }
  0x10   : > { %p1226_p5 = por %p244_p2, %p243_p0  ;;  %p1230_p6 = por %p250_p4, %p249_p3 }
  0x11   : > { %p870_p7 = scmp.ge.s32.totalorder %s1126_s16, 1  ;;  %p322_p8 = scmp.lt.s32.totalorder %s1126_s16, 3 }
  0x13   : > { %p323_p9 = pnand %p870_p7, %p322_p8 }
  0x14   : > { %s1440_s1 = sld [smem:[#allocation9_spill]] (!%p323_p9)  ;;  %v1128_v1 = vmov (!%p323_p9), 0.0   ;;  %vm1129_vm0 = vmmov (!%p323_p9), 0   ;;  %p368_p10 = scmp.lt.s32.totalorder (!%p323_p9), %s1209_s17, 1  ;;  %vm402_vm1 = vcmask (!%p323_p9), 261120   ;;  %v1014_v7 = vld [vmem:[%s1426_s6] sm:$0xff] (!%p323_p9)  }
  0x15   : > { %326 = sbr.rel (%p323_p9) target bundleno = 847 (0x34f), region = 52  ;;  %919 = vmatprep.subr.bf16.mxu1 (!%p323_p9), %v1128_v1  ;;  %935 = vmatprep.subr.bf16.mxu0 (!%p323_p9), %v1128_v1  ;;  %s1441_s0 = sld [smem:[#allocation8_spill]] (!%p323_p9)  ;;  %v1015_v8 = vld [vmem:[%s1426_s6 + $0x8] sm:$0xff] (!%p323_p9)   ;;  %v1016_v9 = vld [vmem:[%s1426_s6 + $0x10] sm:$0xff] (!%p323_p9)   ;;  %v1017_v10 = vld [vmem:[%s1426_s6 + $0x18] sm:$0xff] (!%p323_p9)   ;;  %vm524_vm3 = vcmask (!%p323_p9), 31744  }
  0x16   : > { %923 = vmatprep.mubr.msk.bf16.mxu1 (!%p323_p9), %vm1129_vm0, %v1128_v1  ;;  %951 = vmatprep.mubr.msk.bf16.mxu0 (!%p323_p9), %vm1129_vm0, %v1128_v1  ;;  %s1442_s3 = sld [smem:[#allocation11_spill]] (!%p323_p9)  ;;  %v1018_v11 = vld [vmem:[%s1426_s6 + $0x20] sm:$0xff] (!%p323_p9)   ;;  %v1019_v12 = vld [vmem:[%s1426_s6 + $0x28] sm:$0xff] (!%p323_p9)   ;;  %v1021_v13 = vld [vmem:[%s1426_s6 + $0x30] sm:$0xff] (!%p323_p9)   ;;  %s1443_s2 = sld [smem:[#allocation10_spill]] (!%p323_p9) }
  0x17   : > { %936 = vmatpush3.bf16.msra.mxu0 (!%p323_p9), %v1014_v7  ;;  %v1020_v30 = vld [vmem:[%s1425_s5] sm:$0xff] (!%p323_p9)   ;;  %v1022_v32 = vld [vmem:[%s1425_s5 + $0x8] sm:$0xff] (!%p323_p9)   ;;  %v1023_v33 = vld [vmem:[%s1426_s6 + $0x38] sm:$0xff] (!%p323_p9)   ;;  %s1322_s21 = sand.u32 (!%p323_p9), 1, %s1118_s14   ;;  %s1433_s28 = sshll.u32 (!%p323_p9), %s1209_s17, 7 }
  0x18   : > { %937 = vmatprep.subr.bf16.mxu0 (!%p323_p9), %v1128_v1  ;;  %v879_v34 = vld [vmem:[%s1424_s4] ss:$0 sm:$0xff] (!%p323_p9)  ;;  %s1432_s25 = sshll.u32 (!%p323_p9), %s1322_s21, 3  ;;  %s1130_s26 = smov (!%p323_p9), 96  }
  0x19   : > { %v894_v52 = vld [vmem:[%s1427_s7] ss:$0 sm:$0xff] (!%p323_p9)  ;;  %s360_s11 = scalar_lea.vmem (!%p323_p9), [#allocation2], %s1432_s25  ;;  %s718_s27 = scalar_lea.sflag (!%p323_p9), [#allocation3], %s1322_s21 }
  0x1a   : > { %v1010_v0 = vld [vmem:[%s1440_s1] sm:$0xff] (!%p323_p9)   ;;  %v1011_v2 = vld [vmem:[%s1440_s1 + $0x8] sm:$0xff] (!%p323_p9)   ;;  %s739_s12 = sshll.u32 (!%p323_p9), %s360_s11, 4  ;;  %s1338_s12 = int_to_ptr.vmem [resolvable:$true] %s739_s12 }
  0x1b   : > { %920 = vmatpush3.bf16.msra.mxu1 (!%p323_p9), %v1010_v0  ;;  %938 = vmatpush3.bf16.msra.mxu0 (!%p323_p9), %v1015_v8  ;;  %s1032_s25 = scalar_lea.vmem (!%p323_p9), %s1338_s12, 128 }
  0x1c   : > { %921 = vmatprep.subr.bf16.mxu1 %v1128_v1  ;;  %s1251_s29 = scalar_select %p368_p10, %s1209_s17, 1  ;;  %v1012_v5 = vld [vmem:[%s1442_s3] sm:$0xff]   ;;  %v1013_v6 = vld [vmem:[%s1442_s3 + $0x8] sm:$0xff]   ;;  %939 = vmatprep.subr.bf16.mxu0 %v1128_v1 }
  0x1d   : > { %v875_v14 = vld [vmem:[%s1443_s2] ss:$0 sm:$0xff]  ;;  %p1033_p11 = scmp.ne.s32.totalorder %s1338_s12, %s1032_s25 }
  0x1e   : > { %s1431_s30 = sshll.u32 %s1251_s29, 3 }
  0x1f   : > { %922 = vmatpush3.bf16.msra.mxu1 %v1011_v2  ;;  %s371_s18 = scalar_lea.vmem %s1441_s0, %s1431_s30  ;;  %940 = vmatpush3.bf16.msra.mxu0 %v1016_v9  ;;  %s1336_s30 = scalar_lea.hbm %s1429_s9, %s1433_s28 }
  0x20   : > { %927 = vmatprep.subr.bf16.mxu1 %v1128_v1  ;;  %v377_v3 = vld [vmem:[%s371_s18] sm:$0xff]  ;;  %941 = vmatprep.subr.bf16.mxu0 %v1128_v1  ;;  %p1034_p12 = pnand %p1033_p11, %p1226_p5  ;;  %s1131_s0 = smov [#allocation2]  }
  0x21   : > { %v378_v4 = vpack.c.bf16 %v377_v3, %v377_v3  ;;  %s1036_s1 = sshll.u32 %s1131_s0, 4  ;;  %s1037_s1 = int_to_ptr.vmem [resolvable:$false] %s1036_s1 }
  0x22   : > { %p1035_p13 = pneg %p1034_p12  ;;  %s1038_s18 = scalar_lea.vmem %s1037_s1, 256 }
  0x23   : > { %924 = vmatmul.mubr.msk.bf16.vlgmr.msra.gmra.mrb[0].mxu1 %vm402_vm1, %v378_v4  ;;  %942 = vmatpush3.bf16.msra.mxu0 %v1017_v10  ;;  %p1039_p0 = scmp.lt.s32.totalorder %s1338_s12, %s1037_s1  ;;  %p1040_p1 = scmp.lt.s32.totalorder %s1038_s18, %s1032_s25 }
  0x24   : > { %931 = vmatprep.mubr.msk.bf16.mxu1 %vm1129_vm0, %v1128_v1  ;;  %928 = vmatpush3.bf16.msra.mxu1 %v1012_v5 }
  0x25   : > { %929 = vmatprep.subr.bf16.mxu1 %v1128_v1  ;;  %943 = vmatprep.subr.bf16.mxu0 %v1128_v1  ;;  %p1041_p2 = por %p1040_p1, %p1039_p0 }
  0x27   : > { %944 = vmatpush3.bf16.msra.mxu0 %v1018_v11  ;;  %p1042_p3 = pnand %p1041_p2, %p1035_p13 }
  0x28   : > { %930 = vmatpush3.bf16.msra.mxu1 %v1013_v6  ;;  %945 = vmatprep.subr.bf16.mxu0 %v1128_v1 }
  0x29   : > { %955 = vmatprep.subr.bf16.mxu1 %v1128_v1 }
  0x2b   : > { %946 = vmatpush3.bf16.msra.mxu0 %v1019_v12 }
  0x2c   : > { %947 = vmatprep.subr.bf16.mxu0 %v1128_v1 }
  0x2f   : > { %948 = vmatpush3.bf16.msra.mxu0 %v1021_v13 }
  0x30   : > { %949 = vmatprep.subr.bf16.mxu0 %v1128_v1 }
  0x33   : > { %950 = vmatpush3.bf16.msra.mxu0 %v1023_v33 }
  0xf6   : > { %v440_v15 = vpop.f32.mrb[0].mxu1 }
  0xf7   : > { %v441_v16 = vadd.f32 %v875_v14, %v440_v15  ;;  %v925_v17 = vpop.f32.mrb[1].mxu1 }
  0xf8   : > { %v443_v18 = vpop.f32.mrb[2].mxu1 }
  0xf9   : > { %v446_v19 = vmin.f32 %v441_v16, 20.0  ;;  %v926_v20 = vpop.f32.mrb[3].mxu1  ;;  %vm455_vm2 = vcmp.gt.f32.partialorder %v441_v16, 20.0 }
  0xfb   : > { %v447_v21 = vmul.f32 1.442695, %v446_v19 }
  0xfd   : > { %1024 = vpow2.f32 %v447_v21 }
 0x107   : > { %v1025_v22 = vpop.eup %1024 }
 0x108   : > { %v449_v23 = vadd.f32 2.0, %v1025_v22 }
 0x10a   : > { %v450_v24 = vmul.f32 %v1025_v22, %v449_v23 }
 0x10c   : > { %v452_v25 = vadd.f32 2.0, %v450_v24  ;;  %v451_v26 = vmul.f32 %v450_v24, %v441_v16 }
 0x10e   : > { %1026 = vrcp.f32 %v452_v25 }
 0x118   : > { %v1027_v27 = vpop.eup %1026 }
 0x119   : > { %v454_v28 = vmul.f32 %v1027_v27, %v451_v26 }
 0x11b   : > { %v456_v29 = vsel %vm455_vm2, %v441_v16, %v454_v28 }
 0x11c   : > { %v457_v31 = vpack.c.bf16 %v456_v29, %v456_v29 }
 0x11e   : > { %932 = vmatmul.mubr.msk.bf16.vlgmr.msra.gmra.mrb[4].mxu1 %vm402_vm1, %v457_v31 }
 0x11f   : > { %956 = vmatpush3.bf16.msra.mxu1 %v1020_v30  ;;  %959 = vmatprep.mubr.msk.bf16.mxu1 %vm1129_vm0, %v1128_v1 }
 0x120   : > { %957 = vmatprep.subr.bf16.mxu1 %v1128_v1 }
 0x123   : > { %958 = vmatpush3.bf16.msra.mxu1 %v1022_v32 }
 0x126   : > { %960 = vmatmul.mubr.msk.bf16.vlgmr.msra.gmra.mrb[8].mxu1 %vm402_vm1, %v378_v4 }
 0x1f1   : > { %v518_v35 = vpop.f32.mrb[4].mxu1 }
 0x1f2   : > { %v519_v36 = vadd.f32 %v879_v34, %v518_v35  ;;  %v933_v37 = vpop.f32.mrb[5].mxu1 }
 0x1f3   : > { %v521_v38 = vpop.f32.mrb[6].mxu1 }
 0x1f4   : > { %v934_v39 = vpop.f32.mrb[7].mxu1  ;;  %v525_v40 = vsel %vm524_vm3, %v519_v36, -inf  ;;  %v542_v41 = vpack.c.bf16 %v519_v36, %v519_v36 }
 0x1f5   : > { %526 = vmax.xlane.f32.xlu0 %v525_v40 }
 0x1f6   : > { %952 = vmatmul.mubr.bf16.vlgmr.msra.gmra.mrb[0].mxu0 %v542_v41 }
 0x1f9   : > { %v693_v42 = vpop.f32.mrb[8].mxu1 }
 0x1fa   : > { %v961_v43 = vpop.f32.mrb[9].mxu1 }
 0x1fb   : > { %v696_v44 = vpop.f32.mrb[10].mxu1 }
 0x1fc   : > { %v962_v45 = vpop.f32.mrb[11].mxu1 }
 0x282   : > { %v527_v46 = vpop.xlane.xlu0 %526 }
 0x283   : > { %v528_v47 = vsub.f32 %v519_v36, %v527_v46 }
 0x285   : > { %v529_v48 = vmul.f32 1.442695, %v528_v47 }
 0x287   : > { %1028 = vpow2.f32 %v529_v48 }
 0x291   : > { %v1029_v49 = vpop.eup %1028 }
 0x292   : > { %v531_v50 = vsel %vm524_vm3, %v1029_v49, 0.0 }
 0x293   : > { %532 = vadd.xlane.f32.xlu0 %v531_v50 }
 0x2c9   : > { %v641_v51 = vpop.f32.mrb[0].mxu0 }
 0x2ca   : > { %v694_v53 = vadd.f32 %v693_v42, %v641_v51  ;;  %v953_v54 = vpop.f32.mrb[1].mxu0 }
 0x2cb   : > { %v644_v55 = vpop.f32.mrb[2].mxu0 }
 0x2cc   : > { %v954_v56 = vpop.f32.mrb[3].mxu0  ;;  %v706_v57 = vadd.f32 %v894_v52, %v694_v53 }
 0x2ce   : > { %709 = vrot.lane.b32.xlu1 %v706_v57, %s1130_s26  ;;  %707 = vst.msk [vmem:[%s360_s11] sm:$0xff] %vm402_vm1, %v706_v57 }
 0x2cf   : > { %1045 = shalt.err (!%p1042_p3)
}
 0x2d0   : > { %s1046_s11 = scalar_lea.hbm %s1336_s30, 128  ;;  %s1050_s0 = scalar_lea.hbm %s1429_s9, 256 }
 0x2d1   : > { %p1047_p4 = scmp.ne.s32.totalorder %s1336_s30, %s1046_s11  ;;  %p1051_p9 = scmp.lt.u32.totalorder %s1336_s30, %s1429_s9 }
 0x2d2   : > { %p1052_p10 = scmp.lt.u32.totalorder %s1050_s0, %s1046_s11  ;;  %p1054_p12 = scmp.lt.u32.totalorder %s1046_s11, %s1336_s30 }
 0x2d3   : > { %p1048_p7 = pnand %p1047_p4, %p1226_p5 }
 0x2d4   : > { %p1053_p11 = por %p1052_p10, %p1051_p9 }
 0x2d5   : > { %p1049_p8 = pneg %p1048_p7 }
 0x2d6   : > { %p1055_p13 = por %p1054_p12, %p1053_p11 }
 0x2d8   : > { %p1056_p0 = pnand %p1055_p13, %p1049_p8 }
 0x2da   : > { %1059 = shalt.err (!%p1056_p0)
}
 0x2db   : > { %963 = dma.vmem_to_hbm [thread:$0]  (%p1226_p5), %s1338_s12, 128, %s1336_s30, %s718_s27  }
 0x2dc   : > { %s1444_s25 = sshll.u32 %s1251_s29, 3  ;;  %s1445_s20 = sshll.u32 %s1322_s21, 3 }
 0x2dd   : > { %s375_s11 = scalar_lea.vmem %s1428_s8, %s1444_s25  ;;  %s367_s26 = scalar_lea.vmem [#allocation4], %s1445_s20 }
 0x2de   : > { %s752_s0 = sshll.u32 %s367_s26, 4  ;;  %s1446_s1 = sshll.u32 %s1209_s17, 7  ;;  %s1378_s0 = int_to_ptr.vmem [resolvable:$true] %s752_s0 }
 0x2df   : > { %s1376_s30 = scalar_lea.hbm %s1430_s10, %s1446_s1  ;;  %s723_s29 = scalar_lea.sflag [#allocation5], %s1322_s21 }
 0x2e0   : > { %s1060_s12 = scalar_lea.vmem %s1378_s0, 128  ;;  %s1132_s17 = smov [#allocation4]  }
 0x2e1   : > { %p1061_p1 = scmp.ne.s32.totalorder %s1378_s0, %s1060_s12  ;;  %s1064_s27 = sshll.u32 %s1132_s17, 4  ;;  %s1065_s27 = int_to_ptr.vmem [resolvable:$false] %s1064_s27 }
 0x2e2   : > { %s1066_s2 = scalar_lea.vmem %s1065_s27, 256  ;;  %p1067_p4 = scmp.lt.s32.totalorder %s1378_s0, %s1065_s27 }
 0x2e3   : > { %p1062_p2 = pnand %p1061_p1, %p1226_p5  ;;  %p1068_p7 = scmp.lt.s32.totalorder %s1066_s2, %s1060_s12 }
 0x2e5   : > { %p1063_p3 = pneg %p1062_p2  ;;  %p1069_p8 = por %p1068_p7, %p1067_p4 }
 0x2e7   : > { %p1070_p9 = pnand %p1069_p8, %p1063_p3 }
 0x320   : > { %v533_v58 = vpop.xlane.xlu0 %532 }
 0x321   : > { %1030 = vlog2.f32 %v533_v58 }
 0x32b   : > { %v1031_v59 = vpop.eup %1030 }
 0x32c   : > { %v535_v60 = vmul.f32 0.6931472, %v1031_v59 }
 0x32e   : > { %v536_v61 = vsub.f32 %v528_v47, %v535_v60 }
 0x330   : > { %537 = vst.msk [vmem:[%s375_s11] sm:$0xff] %vm524_vm3, %v536_v61 }
 0x340   : > { %v710_v62 = vpop.permute.xlu1 %709 }
 0x341   : > { %712 = vst.msk [vmem:[%s367_s26] sm:$0xff] %vm402_vm1, %v710_v62 }
 0x342   : > { %1073 = shalt.err (!%p1070_p9)
}
 0x343   : > { %s1074_s3 = scalar_lea.hbm %s1376_s30, 128  ;;  %s1078_s28 = scalar_lea.hbm %s1430_s10, 256 }
 0x344   : > { %p1075_p10 = scmp.ne.s32.totalorder %s1376_s30, %s1074_s3  ;;  %p1079_p13 = scmp.lt.u32.totalorder %s1376_s30, %s1430_s10 }
 0x345   : > { %p1080_p0 = scmp.lt.u32.totalorder %s1078_s28, %s1074_s3  ;;  %p1082_p2 = scmp.lt.u32.totalorder %s1074_s3, %s1376_s30 }
 0x346   : > { %p1076_p11 = pnand %p1075_p10, %p1226_p5 }
 0x347   : > { %p1081_p1 = por %p1080_p0, %p1079_p13 }
 0x348   : > { %p1077_p12 = pneg %p1076_p11 }
 0x349   : > { %p1083_p3 = por %p1082_p2, %p1081_p1 }
 0x34b   : > { %p1084_p4 = pnand %p1083_p3, %p1077_p12 }
 0x34d   : > { %1087 = shalt.err (!%p1084_p4)
}
 0x34e   : > { %964 = dma.vmem_to_hbm [thread:$0]  (%p1226_p5), %s1378_s0, 128, %s1376_s30, %s723_s29  }
 0x34f PF: > { %p974_p7 = scmp.ge.s32.totalorder %s1126_s16, 2  ;;  %s771_s20 = sand.u32 1, %s1114_s13  }
 0x350   : > { %s772_s26 = scalar_lea.sflag [#allocation3], %s771_s20 }
 0x351   : > { %p968_p8 = pnand %p974_p7, %p1230_p6 }
 0x353   : > { %1105 = dma.done.wait (!%p968_p8), %s772_s26, 128  }
 0x354   : > { %1107 = vsyncadd (!%p968_p8), %s772_s26, 4294967168  ;;  %s781_s1 = scalar_lea.sflag [#allocation5], %s771_s20 }
 0x355   : > { %1109 = dma.done.wait (!%p968_p8), %s781_s1, 128  }
 0x356   : > { %1111 = vsyncadd (!%p968_p8), %s781_s1, 4294967168  ;;  %p24_p5 = scmp.ge.s32.totalorder %s1213_s19, 4   ;;  %s1447_s13 = smov %s1118_s14 }
 0x357   : > { %s1448_s14 = smov %s1122_s15  ;;  %s1449_s15 = smov %s1224_s22 }
 0x358   : > { %s1450_s16 = smov %s1213_s19  ;;  %26 = sbr.rel (!%p24_p5) target bundleno = 10 (0xa), region = 116 }
 0x35f   :  { %786 = vsyncpa [#allocation3], 1 }
 0x360   :  { %788 = vsyncpa [#allocation3 + $0x1], 1 }
 0x361   :  { %789 = vsyncpa [#allocation5], 1 }
 0x362   :  { %791 = vsyncpa [#allocation5 + $0x1], 1 }

</bundles_post_ra>
